<compile_context>
chip_gen: v7x
topology: tpu7x:2x2x1
jax: 0.10.0
libtpu: 0.0.40
codegen_flags: <defaults>
</compile_context>

<pallas_src>
import functools

import jax
import jax.numpy as jnp
from jax.experimental import pallas as pl
from jax.experimental.pallas import tpu as pltpu


NEG_BIG = -1e30  # finite "minus infinity" for padded atom columns (avoids inf-inf = NaN)


def _round_up(x, m):
    return ((x + m - 1) // m) * m


def rainbow_kernel(n_relu, A, Np, hq_w, is_dueling, *refs):
    """refs = [obs] + n_relu*(w, b) + [wqv, bqv, wq2, bq2, (wv2, bv2)] + [out]."""
    f32, bf16 = jnp.float32, jnp.bfloat16

    obs_ref = refs[0]
    out_ref = refs[-1]

    # --- base model ReLU layers (bf16 operands -> MXU; bias/ReLU in f32) ---
    h = obs_ref[...].astype(bf16)
    idx = 1
    for _ in range(n_relu):
        w, b = refs[idx], refs[idx + 1]
        idx += 2
        h = jnp.maximum(
            jnp.dot(h, w[...], preferred_element_type=f32) + b[...], 0.0
        ).astype(bf16)

    if is_dueling:
        wqv, bqv, wq2, bq2, wv2, bv2 = refs[idx:idx + 6]
    else:
        wqv, bqv, wq2, bq2 = refs[idx:idx + 4]

    # --- fused (model-final-linear ∘ Q|V-first-layer): single MXU pass -> (Bt, 256[+256]) ---
    hqv = jnp.maximum(jnp.dot(h, wqv[...], preferred_element_type=f32) + bqv[...], 0.0)
    hq = hqv[:, :hq_w].astype(bf16)                                # lane-aligned (hq_w = 256)
    q = jnp.dot(hq, wq2[...], preferred_element_type=f32) + bq2[...]   # (Bt, A*Np)

    if is_dueling:
        hv = hqv[:, hq_w:].astype(bf16)
        v = jnp.dot(hv, wv2[...], preferred_element_type=f32) + bv2[...]  # (Bt, Np)

        # mean over the action dim, built from 128-aligned (Bt, Np) lane slabs of q
        q_mean = q[:, :Np]
        for a in range(1, A):
            q_mean = q_mean + q[:, a * Np:(a + 1) * Np]
        q_mean = q_mean * (1.0 / A)

        adj = v - q_mean                                   # (Bt, Np)
        logits = q + jnp.concatenate([adj] * A, axis=1)    # one fused VPU pass over the slab
    else:
        logits = q

    Bt = logits.shape[0]

    # --- per-action softmax over atoms; epilogue vectorized across the whole slab ---
    m_parts = [jnp.max(logits[:, a * Np:(a + 1) * Np], axis=-1, keepdims=True)
               for a in range(A)]
    m_full = jnp.concatenate([jnp.broadcast_to(m, (Bt, Np)) for m in m_parts], axis=1)

    e = jnp.exp(logits - m_full)                           # ONE long EUP exp stream

    r_parts = [pl.reciprocal(jnp.sum(e[:, a * Np:(a + 1) * Np], axis=-1, keepdims=True),
                             approx=True)
               for a in range(A)]
    r_full = jnp.concatenate([jnp.broadcast_to(r, (Bt, Np)) for r in r_parts], axis=1)

    out_ref[...] = e * r_full                              # single lane-dense (Bt, A*Np) store


def prepare_params(params, *, output_dim, num_atoms, is_dueling):
    """Fold model-final-linear into the fused Q|V first layer, lane-pad atoms, cast to bf16.

    `params` layout (flat): model (w, b)*  then  wq1, bq1, wq2, bq2, wv1, bv1, wv2, bv2.
    The model's LAST (w, b) pair is its activation-free output layer and is folded away.
    """
    params = list(params)
    wq1, bq1, wq2, bq2, wv1, bv1, wv2, bv2 = params[-8:]
    model = params[:-8]
    n_relu = len(model) // 2 - 1
    relu_layers = model[:-2]
    w_last, b_last = model[-2], model[-1]

    A, N = output_dim, num_atoms
    Np = _round_up(N, 128)

    def W(w):   # matmul operand -> bf16
        return w.astype(jnp.bfloat16)

    def Bf(b):  # bias -> f32 (elementwise path stays f32)
        return b.astype(jnp.float32)

    # Pad Q output layer per action block: zero weights, -1e30 bias on padded atoms so that
    # exp(padded logit - max) == 0 exactly -> padded atoms never dilute the softmax.
    wq2p = jnp.zeros((wq2.shape[0], A * Np), jnp.float32)
    bq2p = jnp.full((1, A * Np), NEG_BIG, jnp.float32)
    for a in range(A):
        wq2p = wq2p.at[:, a * Np:a * Np + N].set(wq2[:, a * N:(a + 1) * N])
        bq2p = bq2p.at[:, a * Np:a * Np + N].set(bq2[:, a * N:(a + 1) * N])

    wv2p = jnp.zeros((wv2.shape[0], Np), jnp.float32).at[:, :N].set(wv2)
    bv2p = jnp.full((1, Np), NEG_BIG, jnp.float32).at[:, :N].set(bv2)

    if is_dueling:
        wqv1 = jnp.concatenate([wq1, wv1], axis=1)   # (last, 512): one MXU pass for both heads
        bqv1 = jnp.concatenate([bq1, bv1], axis=1)
    else:
        wqv1, bqv1 = wq1, bq1

    # Fold: hidden = h @ w_last + b_last (linear, no activation) feeds only the Q|V first
    # layer, so  relu(hidden @ wqv1 + bqv1) == relu(h @ (w_last @ wqv1) + (b_last @ wqv1 + bqv1)).
    wqv1_f = jnp.dot(w_last.astype(jnp.float32), wqv1.astype(jnp.float32))
    bqv1_f = jnp.dot(b_last.astype(jnp.float32), wqv1.astype(jnp.float32)) + bqv1.astype(jnp.float32)

    prepared = []
    for i in range(n_relu):
        prepared += [W(relu_layers[2 * i]), Bf(relu_layers[2 * i + 1])]
    prepared += [W(wqv1_f), Bf(bqv1_f), W(wq2p), Bf(bq2p)]
    if is_dueling:
        prepared += [W(wv2p), Bf(bv2p)]

    hq_w = wq1.shape[1]   # 256 in the module (128-multiple -> lane-aligned split of hqv)
    return tuple(prepared), Np, hq_w, n_relu


def rainbow_forward(obs, params, *, output_dim, num_atoms, is_dueling=True, tile_b=128):
    """Returns (probs, state) like RainbowNetwork.forward."""
    A, N = output_dim, num_atoms
    B = obs.shape[0]
    obs2 = obs.reshape(B, -1).astype(jnp.float32)
    D = obs2.shape[1]

    prepared, Np, hq_w, n_relu = prepare_params(
        params, output_dim=A, num_atoms=N, is_dueling=is_dueling)

    # batch tiling: sublane-aligned tile; weights stay VMEM-resident across grid iterations
    tb = min(tile_b, _round_up(B, 8))
    Bp = _round_up(B, tb)
    if Bp != B:
        obs2 = jnp.pad(obs2, ((0, Bp - B), (0, 0)))
    grid = (Bp // tb,)

    in_specs = ([pl.BlockSpec((tb, D), lambda i: (i, 0))] +
                [pl.BlockSpec(p.shape, lambda i: (0, 0)) for p in prepared])
    out_specs = pl.BlockSpec((tb, A * Np), lambda i: (i, 0))

    kernel = functools.partial(rainbow_kernel, n_relu, A, Np, hq_w, is_dueling)
    out_flat = pl.pallas_call(
        kernel,
        out_shape=jax.ShapeDtypeStruct((Bp, A * Np), jnp.float32),
        grid=grid,
        in_specs=in_specs,
        out_specs=out_specs,
        compiler_params=pltpu.CompilerParams(dimension_semantics=("parallel",)),
    )(obs2, *prepared)

    # view(-1, output_dim, num_atoms): drop batch padding and padded atom columns outside.
    probs = out_flat[:B].reshape(B, A, Np)[:, :, :N]
    return probs, None


def init_params(key, d_in, hidden_sizes, output_dim, num_atoms):
    """Deterministic synthetic parameters matching RainbowNetwork.__init__ shapes."""
    last = hidden_sizes[-1]
    model_dims = [d_in] + list(hidden_sizes[:-1]) + [last]   # base model MLP
    q_dims = [last, 256, num_atoms * output_dim]             # Q head (hidden_sizes=[256])
    v_dims = [last, 256, num_atoms]                          # V head (dueling)

    params = []
    for dims in (model_dims, q_dims, v_dims):
        for fan_in, fan_out in zip(dims[:-1], dims[1:]):
            key, kw, kb = jax.random.split(key, 3)
            w = jax.random.normal(kw, (fan_in, fan_out), jnp.float32) * (1.0 / jnp.sqrt(fan_in))
            b = jax.random.normal(kb, (1, fan_out), jnp.float32) * 0.01
            params += [w, b]
    return tuple(params)


def reference_forward(obs, params, *, output_dim, num_atoms, is_dueling=True,
                      matmul_dtype=jnp.float32):
    """Pure-JAX reference of the PyTorch forward (no fusion / folding)."""
    params = list(params)
    wq1, bq1, wq2, bq2, wv1, bv1, wv2, bv2 = params[-8:]
    model = params[:-8]
    f32 = jnp.float32

    def mm(x, w):
        return jnp.dot(x.astype(matmul_dtype), w.astype(matmul_dtype),
                       preferred_element_type=f32)

    h = obs.reshape(obs.shape[0], -1).astype(f32)
    for i in range(len(model) // 2 - 1):
        h = jax.nn.relu(mm(h, model[2 * i]) + model[2 * i + 1])
    hidden = mm(h, model[-2]) + model[-1]

    hq = jax.nn.relu(mm(hidden, wq1) + bq1)
    q = (mm(hq, wq2) + bq2).reshape(-1, output_dim, num_atoms)
    if is_dueling:
        hv = jax.nn.relu(mm(hidden, wv1) + bv1)
        v = (mm(hv, wv2) + bv2).reshape(-1, 1, num_atoms)
        logits = q - q.mean(axis=1, keepdims=True) + v
    else:
        logits = q
    return jax.nn.softmax(logits, axis=2)


if __name__ == "__main__":
    # Small config: batch=8, flattened obs dim 64, hidden_sizes=[64,64,32],
    # output_dim (num actions)=4, num_atoms=51 (canonical Rainbow -> exercises lane padding).
    B, D_IN = 8, 64
    HIDDEN_SIZES = [64, 64, 32]
    OUTPUT_DIM = 4
    NUM_ATOMS = 51
    IS_DUELING = True

    key = jax.random.PRNGKey(0)
    key, k_obs = jax.random.split(key)
    obs = jax.random.normal(k_obs, (B, D_IN), jnp.float32)

    params = init_params(key, D_IN, HIDDEN_SIZES, OUTPUT_DIM, NUM_ATOMS)

    probs, state = rainbow_forward(
        obs, params, output_dim=OUTPUT_DIM, num_atoms=NUM_ATOMS, is_dueling=IS_DUELING)
    probs = jax.block_until_ready(probs)

    # bf16-matmul reference mirrors the kernel's precision (tolerance covers the wrapper-side
    # weight folding + approx reciprocal); f32 reference checked at a looser tolerance.
    ref_bf16 = reference_forward(
        obs, params, output_dim=OUTPUT_DIM, num_atoms=NUM_ATOMS, is_dueling=IS_DUELING,
        matmul_dtype=jnp.bfloat16)
    ref_f32 = reference_forward(
        obs, params, output_dim=OUTPUT_DIM, num_atoms=NUM_ATOMS, is_dueling=IS_DUELING,
        matmul_dtype=jnp.float32)

    assert probs.shape == (B, OUTPUT_DIM, NUM_ATOMS)
    assert jnp.allclose(probs, ref_bf16, atol=2e-2, rtol=2e-2), "mismatch vs bf16 JAX reference"
    assert jnp.allclose(probs, ref_f32, atol=5e-2, rtol=5e-2), "mismatch vs f32 JAX reference"
    assert jnp.allclose(probs.sum(axis=2), 1.0, atol=1e-2), "softmax rows must sum to ~1"

    print("KERNEL_OK")
</pallas_src>

<mosaic_0001>
module attributes {stable_mosaic.version = 11 : i64} {
  func.func @rainbow_kernel(%arg0: i32, %arg1: memref<8x64xf32, #tpu.memory_space<vmem>>, %arg2: memref<64x64xbf16, #tpu.memory_space<vmem>>, %arg3: memref<1x64xf32, #tpu.memory_space<vmem>>, %arg4: memref<64x64xbf16, #tpu.memory_space<vmem>>, %arg5: memref<1x64xf32, #tpu.memory_space<vmem>>, %arg6: memref<64x512xbf16, #tpu.memory_space<vmem>>, %arg7: memref<1x512xf32, #tpu.memory_space<vmem>>, %arg8: memref<256x512xbf16, #tpu.memory_space<vmem>>, %arg9: memref<1x512xf32, #tpu.memory_space<vmem>>, %arg10: memref<256x128xbf16, #tpu.memory_space<vmem>>, %arg11: memref<1x128xf32, #tpu.memory_space<vmem>>, %arg12: memref<8x512xf32, #tpu.memory_space<vmem>>) attributes {dimension_semantics = [#tpu.dimension_semantics<parallel>], iteration_bounds = array<i64: 1>, scalar_prefetch = 0 : i64, scratch_operands = 0 : i64, tpu.core_type = #tpu.core_type<tc>, window_params = [{transform_indices = @transform_0, window_bounds = array<i64: 8, 64>}, {pipeline_mode = #tpu.pipeline_mode<synchronous>, transform_indices = @transform_1, window_bounds = array<i64: 64, 64>}, {pipeline_mode = #tpu.pipeline_mode<synchronous>, transform_indices = @transform_2, window_bounds = array<i64: 1, 64>}, {pipeline_mode = #tpu.pipeline_mode<synchronous>, transform_indices = @transform_3, window_bounds = array<i64: 64, 64>}, {pipeline_mode = #tpu.pipeline_mode<synchronous>, transform_indices = @transform_4, window_bounds = array<i64: 1, 64>}, {pipeline_mode = #tpu.pipeline_mode<synchronous>, transform_indices = @transform_5, window_bounds = array<i64: 64, 512>}, {pipeline_mode = #tpu.pipeline_mode<synchronous>, transform_indices = @transform_6, window_bounds = array<i64: 1, 512>}, {pipeline_mode = #tpu.pipeline_mode<synchronous>, transform_indices = @transform_7, window_bounds = array<i64: 256, 512>}, {pipeline_mode = #tpu.pipeline_mode<synchronous>, transform_indices = @transform_8, window_bounds = array<i64: 1, 512>}, {pipeline_mode = #tpu.pipeline_mode<synchronous>, transform_indices = @transform_9, window_bounds = array<i64: 256, 128>}, {pipeline_mode = #tpu.pipeline_mode<synchronous>, transform_indices = @transform_10, window_bounds = array<i64: 1, 128>}, {transform_indices = @transform_11, window_bounds = array<i64: 8, 512>}]} {
    %c0 = arith.constant 0 : index
    %c0_0 = arith.constant 0 : index
    %0 = vector.load %arg1[%c0, %c0_0] : memref<8x64xf32, #tpu.memory_space<vmem>>, vector<8x64xf32>
    %1 = arith.truncf %0 : vector<8x64xf32> to vector<8x64xbf16>
    %c0_1 = arith.constant 0 : index
    %c0_2 = arith.constant 0 : index
    %2 = vector.load %arg2[%c0_1, %c0_2] : memref<64x64xbf16, #tpu.memory_space<vmem>>, vector<64x64xbf16>
    %cst = arith.constant dense<0.000000e+00> : vector<8x64xf32>
    %3 = tpu.matmul %1, %2, %cst {dimension_numbers = #tpu.dot_dimension_numbers<[1], [0], [0], [1], [0, 0, 1, 1], [], []>} : vector<8x64xbf16>, vector<64x64xbf16>, vector<8x64xf32> -> vector<8x64xf32>
    %c0_3 = arith.constant 0 : index
    %c0_4 = arith.constant 0 : index
    %4 = vector.load %arg3[%c0_3, %c0_4] : memref<1x64xf32, #tpu.memory_space<vmem>>, vector<1x64xf32>
    %5 = vector.broadcast %4 : vector<1x64xf32> to vector<8x64xf32>
    %6 = arith.addf %3, %5 : vector<8x64xf32>
    %cst_5 = arith.constant 0.000000e+00 : f32
    %7 = vector.broadcast %cst_5 : f32 to vector<8x64xf32>
    %8 = arith.maximumf %6, %7 : vector<8x64xf32>
    %9 = arith.truncf %8 : vector<8x64xf32> to vector<8x64xbf16>
    %c0_6 = arith.constant 0 : index
    %c0_7 = arith.constant 0 : index
    %10 = vector.load %arg4[%c0_6, %c0_7] : memref<64x64xbf16, #tpu.memory_space<vmem>>, vector<64x64xbf16>
    %cst_8 = arith.constant dense<0.000000e+00> : vector<8x64xf32>
    %11 = tpu.matmul %9, %10, %cst_8 {dimension_numbers = #tpu.dot_dimension_numbers<[1], [0], [0], [1], [0, 0, 1, 1], [], []>} : vector<8x64xbf16>, vector<64x64xbf16>, vector<8x64xf32> -> vector<8x64xf32>
    %c0_9 = arith.constant 0 : index
    %c0_10 = arith.constant 0 : index
    %12 = vector.load %arg5[%c0_9, %c0_10] : memref<1x64xf32, #tpu.memory_space<vmem>>, vector<1x64xf32>
    %13 = vector.broadcast %12 : vector<1x64xf32> to vector<8x64xf32>
    %14 = arith.addf %11, %13 : vector<8x64xf32>
    %cst_11 = arith.constant 0.000000e+00 : f32
    %15 = vector.broadcast %cst_11 : f32 to vector<8x64xf32>
    %16 = arith.maximumf %14, %15 : vector<8x64xf32>
    %17 = arith.truncf %16 : vector<8x64xf32> to vector<8x64xbf16>
    %c0_12 = arith.constant 0 : index
    %c0_13 = arith.constant 0 : index
    %18 = vector.load %arg6[%c0_12, %c0_13] : memref<64x512xbf16, #tpu.memory_space<vmem>>, vector<64x512xbf16>
    %cst_14 = arith.constant dense<0.000000e+00> : vector<8x512xf32>
    %19 = tpu.matmul %17, %18, %cst_14 {dimension_numbers = #tpu.dot_dimension_numbers<[1], [0], [0], [1], [0, 0, 1, 1], [], []>} : vector<8x64xbf16>, vector<64x512xbf16>, vector<8x512xf32> -> vector<8x512xf32>
    %c0_15 = arith.constant 0 : index
    %c0_16 = arith.constant 0 : index
    %20 = vector.load %arg7[%c0_15, %c0_16] : memref<1x512xf32, #tpu.memory_space<vmem>>, vector<1x512xf32>
    %21 = vector.broadcast %20 : vector<1x512xf32> to vector<8x512xf32>
    %22 = arith.addf %19, %21 : vector<8x512xf32>
    %cst_17 = arith.constant 0.000000e+00 : f32
    %23 = vector.broadcast %cst_17 : f32 to vector<8x512xf32>
    %24 = arith.maximumf %22, %23 : vector<8x512xf32>
    %25 = vector.extract_strided_slice %24 {offsets = [0, 0], sizes = [8, 256], strides = [1, 1]} : vector<8x512xf32> to vector<8x256xf32>
    %26 = arith.truncf %25 : vector<8x256xf32> to vector<8x256xbf16>
    %c0_18 = arith.constant 0 : index
    %c0_19 = arith.constant 0 : index
    %27 = vector.load %arg8[%c0_18, %c0_19] : memref<256x512xbf16, #tpu.memory_space<vmem>>, vector<256x512xbf16>
    %cst_20 = arith.constant dense<0.000000e+00> : vector<8x512xf32>
    %28 = tpu.matmul %26, %27, %cst_20 {dimension_numbers = #tpu.dot_dimension_numbers<[1], [0], [0], [1], [0, 0, 1, 1], [], []>} : vector<8x256xbf16>, vector<256x512xbf16>, vector<8x512xf32> -> vector<8x512xf32>
    %c0_21 = arith.constant 0 : index
    %c0_22 = arith.constant 0 : index
    %29 = vector.load %arg9[%c0_21, %c0_22] : memref<1x512xf32, #tpu.memory_space<vmem>>, vector<1x512xf32>
    %30 = vector.broadcast %29 : vector<1x512xf32> to vector<8x512xf32>
    %31 = arith.addf %28, %30 : vector<8x512xf32>
    %32 = vector.extract_strided_slice %24 {offsets = [0, 256], sizes = [8, 256], strides = [1, 1]} : vector<8x512xf32> to vector<8x256xf32>
    %33 = arith.truncf %32 : vector<8x256xf32> to vector<8x256xbf16>
    %c0_23 = arith.constant 0 : index
    %c0_24 = arith.constant 0 : index
    %34 = vector.load %arg10[%c0_23, %c0_24] : memref<256x128xbf16, #tpu.memory_space<vmem>>, vector<256x128xbf16>
    %cst_25 = arith.constant dense<0.000000e+00> : vector<8x128xf32>
    %35 = tpu.matmul %33, %34, %cst_25 {dimension_numbers = #tpu.dot_dimension_numbers<[1], [0], [0], [1], [0, 0, 1, 1], [], []>} : vector<8x256xbf16>, vector<256x128xbf16>, vector<8x128xf32> -> vector<8x128xf32>
    %c0_26 = arith.constant 0 : index
    %c0_27 = arith.constant 0 : index
    %36 = vector.load %arg11[%c0_26, %c0_27] : memref<1x128xf32, #tpu.memory_space<vmem>>, vector<1x128xf32>
    %37 = vector.broadcast %36 : vector<1x128xf32> to vector<8x128xf32>
    %38 = arith.addf %35, %37 : vector<8x128xf32>
    %39 = vector.extract_strided_slice %31 {offsets = [0, 0], sizes = [8, 128], strides = [1, 1]} : vector<8x512xf32> to vector<8x128xf32>
    %40 = vector.extract_strided_slice %31 {offsets = [0, 128], sizes = [8, 128], strides = [1, 1]} : vector<8x512xf32> to vector<8x128xf32>
    %41 = arith.addf %39, %40 : vector<8x128xf32>
    %42 = vector.extract_strided_slice %31 {offsets = [0, 256], sizes = [8, 128], strides = [1, 1]} : vector<8x512xf32> to vector<8x128xf32>
    %43 = arith.addf %41, %42 : vector<8x128xf32>
    %44 = vector.extract_strided_slice %31 {offsets = [0, 384], sizes = [8, 128], strides = [1, 1]} : vector<8x512xf32> to vector<8x128xf32>
    %45 = arith.addf %43, %44 : vector<8x128xf32>
    %cst_28 = arith.constant 2.500000e-01 : f32
    %46 = vector.broadcast %cst_28 : f32 to vector<8x128xf32>
    %47 = arith.mulf %45, %46 : vector<8x128xf32>
    %48 = arith.subf %38, %47 : vector<8x128xf32>
    %49 = tpu.concatenate %48, %48, %48, %48 in 1 : vector<8x128xf32>, vector<8x128xf32>, vector<8x128xf32>, vector<8x128xf32> -> vector<8x512xf32>
    %50 = arith.addf %31, %49 : vector<8x512xf32>
    %51 = vector.extract_strided_slice %50 {offsets = [0, 0], sizes = [8, 128], strides = [1, 1]} : vector<8x512xf32> to vector<8x128xf32>
    %cst_29 = arith.constant dense<0xFF800000> : vector<8xf32>
    %52 = vector.multi_reduction <maximumf>, %51, %cst_29 [1] : vector<8x128xf32> to vector<8xf32>
    %53 = vector.shape_cast %52 : vector<8xf32> to vector<8x1xf32>
    %54 = vector.extract_strided_slice %50 {offsets = [0, 128], sizes = [8, 128], strides = [1, 1]} : vector<8x512xf32> to vector<8x128xf32>
    %cst_30 = arith.constant dense<0xFF800000> : vector<8xf32>
    %55 = vector.multi_reduction <maximumf>, %54, %cst_30 [1] : vector<8x128xf32> to vector<8xf32>
    %56 = vector.shape_cast %55 : vector<8xf32> to vector<8x1xf32>
    %57 = vector.extract_strided_slice %50 {offsets = [0, 256], sizes = [8, 128], strides = [1, 1]} : vector<8x512xf32> to vector<8x128xf32>
    %cst_31 = arith.constant dense<0xFF800000> : vector<8xf32>
    %58 = vector.multi_reduction <maximumf>, %57, %cst_31 [1] : vector<8x128xf32> to vector<8xf32>
    %59 = vector.shape_cast %58 : vector<8xf32> to vector<8x1xf32>
    %60 = vector.extract_strided_slice %50 {offsets = [0, 384], sizes = [8, 128], strides = [1, 1]} : vector<8x512xf32> to vector<8x128xf32>
    %cst_32 = arith.constant dense<0xFF800000> : vector<8xf32>
    %61 = vector.multi_reduction <maximumf>, %60, %cst_32 [1] : vector<8x128xf32> to vector<8xf32>
    %62 = vector.shape_cast %61 : vector<8xf32> to vector<8x1xf32>
    %63 = vector.shape_cast %53 : vector<8x1xf32> to vector<8x1xf32>
    %64 = vector.broadcast %63 : vector<8x1xf32> to vector<8x128xf32>
    %65 = vector.shape_cast %56 : vector<8x1xf32> to vector<8x1xf32>
    %66 = vector.broadcast %65 : vector<8x1xf32> to vector<8x128xf32>
    %67 = vector.shape_cast %59 : vector<8x1xf32> to vector<8x1xf32>
    %68 = vector.broadcast %67 : vector<8x1xf32> to vector<8x128xf32>
    %69 = vector.shape_cast %62 : vector<8x1xf32> to vector<8x1xf32>
    %70 = vector.broadcast %69 : vector<8x1xf32> to vector<8x128xf32>
    %71 = tpu.concatenate %64, %66, %68, %70 in 1 : vector<8x128xf32>, vector<8x128xf32>, vector<8x128xf32>, vector<8x128xf32> -> vector<8x512xf32>
    %72 = arith.subf %50, %71 : vector<8x512xf32>
    %73 = math.exp %72 : vector<8x512xf32>
    %74 = vector.extract_strided_slice %73 {offsets = [0, 0], sizes = [8, 128], strides = [1, 1]} : vector<8x512xf32> to vector<8x128xf32>
    %cst_33 = arith.constant dense<0.000000e+00> : vector<8xf32>
    %75 = vector.multi_reduction <add>, %74, %cst_33 [1] : vector<8x128xf32> to vector<8xf32>
    %76 = vector.shape_cast %75 : vector<8xf32> to vector<8x1xf32>
    %77 = tpu.reciprocal %76 {approx = true} : vector<8x1xf32> -> vector<8x1xf32>
    %78 = vector.extract_strided_slice %73 {offsets = [0, 128], sizes = [8, 128], strides = [1, 1]} : vector<8x512xf32> to vector<8x128xf32>
    %cst_34 = arith.constant dense<0.000000e+00> : vector<8xf32>
    %79 = vector.multi_reduction <add>, %78, %cst_34 [1] : vector<8x128xf32> to vector<8xf32>
    %80 = vector.shape_cast %79 : vector<8xf32> to vector<8x1xf32>
    %81 = tpu.reciprocal %80 {approx = true} : vector<8x1xf32> -> vector<8x1xf32>
    %82 = vector.extract_strided_slice %73 {offsets = [0, 256], sizes = [8, 128], strides = [1, 1]} : vector<8x512xf32> to vector<8x128xf32>
    %cst_35 = arith.constant dense<0.000000e+00> : vector<8xf32>
    %83 = vector.multi_reduction <add>, %82, %cst_35 [1] : vector<8x128xf32> to vector<8xf32>
    %84 = vector.shape_cast %83 : vector<8xf32> to vector<8x1xf32>
    %85 = tpu.reciprocal %84 {approx = true} : vector<8x1xf32> -> vector<8x1xf32>
    %86 = vector.extract_strided_slice %73 {offsets = [0, 384], sizes = [8, 128], strides = [1, 1]} : vector<8x512xf32> to vector<8x128xf32>
    %cst_36 = arith.constant dense<0.000000e+00> : vector<8xf32>
    %87 = vector.multi_reduction <add>, %86, %cst_36 [1] : vector<8x128xf32> to vector<8xf32>
    %88 = vector.shape_cast %87 : vector<8xf32> to vector<8x1xf32>
    %89 = tpu.reciprocal %88 {approx = true} : vector<8x1xf32> -> vector<8x1xf32>
    %90 = vector.shape_cast %77 : vector<8x1xf32> to vector<8x1xf32>
    %91 = vector.broadcast %90 : vector<8x1xf32> to vector<8x128xf32>
    %92 = vector.shape_cast %81 : vector<8x1xf32> to vector<8x1xf32>
    %93 = vector.broadcast %92 : vector<8x1xf32> to vector<8x128xf32>
    %94 = vector.shape_cast %85 : vector<8x1xf32> to vector<8x1xf32>
    %95 = vector.broadcast %94 : vector<8x1xf32> to vector<8x128xf32>
    %96 = vector.shape_cast %89 : vector<8x1xf32> to vector<8x1xf32>
    %97 = vector.broadcast %96 : vector<8x1xf32> to vector<8x128xf32>
    %98 = tpu.concatenate %91, %93, %95, %97 in 1 : vector<8x128xf32>, vector<8x128xf32>, vector<8x128xf32>, vector<8x128xf32> -> vector<8x512xf32>
    %99 = arith.mulf %73, %98 : vector<8x512xf32>
    %c0_37 = arith.constant 0 : index
    %c0_38 = arith.constant 0 : index
    %100 = vector.load %arg12[%c0_37, %c0_38] : memref<8x512xf32, #tpu.memory_space<vmem>>, vector<8x512xf32>
    tpu.vector_store %arg12[%c0_37, %c0_38], %99 {strides = array<i32>} : memref<8x512xf32, #tpu.memory_space<vmem>>, vector<8x512xf32>,
    return
  }
  func.func @transform_0(%arg0: i32) -> (i32, i32) {
    %c0_i32 = arith.constant 0 : i32
    %c0_i32_0 = arith.constant 0 : i32
    return %arg0, %c0_i32 : i32, i32
  }
  func.func @transform_1(%arg0: i32) -> (i32, i32) {
    %c0_i32 = arith.constant 0 : i32
    %c0_i32_0 = arith.constant 0 : i32
    %c0_i32_1 = arith.constant 0 : i32
    return %c0_i32, %c0_i32_0 : i32, i32
  }
  func.func @transform_2(%arg0: i32) -> (i32, i32) {
    %c0_i32 = arith.constant 0 : i32
    %c0_i32_0 = arith.constant 0 : i32
    %c0_i32_1 = arith.constant 0 : i32
    return %c0_i32, %c0_i32_0 : i32, i32
  }
  func.func @transform_3(%arg0: i32) -> (i32, i32) {
    %c0_i32 = arith.constant 0 : i32
    %c0_i32_0 = arith.constant 0 : i32
    %c0_i32_1 = arith.constant 0 : i32
    return %c0_i32, %c0_i32_0 : i32, i32
  }
  func.func @transform_4(%arg0: i32) -> (i32, i32) {
    %c0_i32 = arith.constant 0 : i32
    %c0_i32_0 = arith.constant 0 : i32
    %c0_i32_1 = arith.constant 0 : i32
    return %c0_i32, %c0_i32_0 : i32, i32
  }
  func.func @transform_5(%arg0: i32) -> (i32, i32) {
    %c0_i32 = arith.constant 0 : i32
    %c0_i32_0 = arith.constant 0 : i32
    %c0_i32_1 = arith.constant 0 : i32
    return %c0_i32, %c0_i32_0 : i32, i32
  }
  func.func @transform_6(%arg0: i32) -> (i32, i32) {
    %c0_i32 = arith.constant 0 : i32
    %c0_i32_0 = arith.constant 0 : i32
    %c0_i32_1 = arith.constant 0 : i32
    return %c0_i32, %c0_i32_0 : i32, i32
  }
  func.func @transform_7(%arg0: i32) -> (i32, i32) {
    %c0_i32 = arith.constant 0 : i32
    %c0_i32_0 = arith.constant 0 : i32
    %c0_i32_1 = arith.constant 0 : i32
    return %c0_i32, %c0_i32_0 : i32, i32
  }
  func.func @transform_8(%arg0: i32) -> (i32, i32) {
    %c0_i32 = arith.constant 0 : i32
    %c0_i32_0 = arith.constant 0 : i32
    %c0_i32_1 = arith.constant 0 : i32
    return %c0_i32, %c0_i32_0 : i32, i32
  }
  func.func @transform_9(%arg0: i32) -> (i32, i32) {
    %c0_i32 = arith.constant 0 : i32
    %c0_i32_0 = arith.constant 0 : i32
    %c0_i32_1 = arith.constant 0 : i32
    return %c0_i32, %c0_i32_0 : i32, i32
  }
  func.func @transform_10(%arg0: i32) -> (i32, i32) {
    %c0_i32 = arith.constant 0 : i32
    %c0_i32_0 = arith.constant 0 : i32
    %c0_i32_1 = arith.constant 0 : i32
    return %c0_i32, %c0_i32_0 : i32, i32
  }
  func.func @transform_11(%arg0: i32) -> (i32, i32) {
    %c0_i32 = arith.constant 0 : i32
    %c0_i32_0 = arith.constant 0 : i32
    return %arg0, %c0_i32 : i32, i32
  }
}

</mosaic_0001>

<bundles_post_ra>
// kernel: tpu_custom_call.1
= control target key start
LH: loop header
LB: loop body
LE: loop exit
PB: predicated region body
PF: predicated region fallthrough
CT: control target
= control target key end

     0   :  { %16 = vsyncpa [#allocation3], 0  ;;  %s1963_s0 = inlined_call_operand.hbm [shape: f32[8,64], index: 0, kind: input, shape index: {}]   ;;  %s1964_s1 = inlined_call_operand.hbm [shape: bf16[64,64], index: 1, kind: input, shape index: {}]   ;;  %s1965_s2 = inlined_call_operand.vmem [shape: f32[1,64], index: 2, kind: input, shape index: {}]   ;;  %s1966_s3 = inlined_call_operand.hbm [shape: bf16[64,64], index: 3, kind: input, shape index: {}]   ;;  %s1967_s4 = inlined_call_operand.vmem [shape: f32[1,64], index: 4, kind: input, shape index: {}]   ;;  %s1968_s5 = inlined_call_operand.hbm [shape: bf16[64,512], index: 5, kind: input, shape index: {}]   ;;  %s1969_s6 = inlined_call_operand.vmem [shape: f32[1,512], index: 6, kind: input, shape index: {}]   ;;  %s1970_s7 = inlined_call_operand.hbm [shape: bf16[256,512], index: 7, kind: input, shape index: {}]   ;;  %s1971_s8 = inlined_call_operand.vmem [shape: f32[1,512], index: 8, kind: input, shape index: {}]   ;;  %s1972_s9 = inlined_call_operand.hbm [shape: bf16[256,128], index: 9, kind: input, shape index: {}]   ;;  %s1973_s10 = inlined_call_operand.vmem [shape: f32[1,128], index: 10, kind: input, shape index: {}]   ;;  %s1974_s11 = inlined_call_operand.hbm [shape: f32[8,512], index: 11, kind: output, shape index: {}]  }
   0x1   :  { %17 = vsyncpa [#allocation6], 0 }
   0x2   :  { %18 = vsyncpa [#allocation9], 0 }
   0x3   :  { %19 = vsyncpa [#allocation12], 0 }
   0x4   :  { %20 = vsyncpa [#allocation4], 0  ;;  %s1737_s17 = smov [#allocation5]   ;;  %s1573_s21 = scalar_lea.hbm %s1964_s1, 512 }
   0x5   :  { %s36_s18 = sshll.u32 %s1737_s17, 4  ;;  %p1574_p0 = scmp.ne.s32.totalorder %s1964_s1, %s1573_s21  ;;  %s37_s18 = int_to_ptr.vmem [resolvable:$true] %s36_s18 }
   0x6   :  { %p1577_p1 = scmp.lt.u32.totalorder %s1573_s21, %s1964_s1 }
   0x8   :  { %p1579_p2 = pnand %p1577_p1, %p1574_p0 }
   0xa   :  { %1582 = shalt.err (!%p1579_p2)
}
   0xb   :  { %s1583_s26 = scalar_lea.vmem %s37_s18, 512  ;;  %p1588_p4 = scmp.lt.s32.totalorder %s37_s18, %s37_s18 }
   0xc   :  { %p1584_p3 = scmp.ne.s32.totalorder %s37_s18, %s1583_s26  ;;  %p1589_p5 = scmp.lt.s32.totalorder %s1583_s26, %s1583_s26 }
   0xe   :  { %p1590_p6 = por %p1589_p5, %p1588_p4 }
  0x10   :  { %p1591_p7 = pnand %p1590_p6, %p1584_p3 }
  0x12   :  { %1594 = shalt.err (!%p1591_p7)
}
  0x13   :  { %s1738_s27 = smov 64   ;;  %s1739_s28 = smov 4  }
  0x14   :  { %42 = dma.hbm_to_vmem [thread:$0]  %s1964_s1, 512, %s37_s18, [#allocation6], %s1738_s27, %s1738_s27, %s1739_s28  }
  0x15   :  { %s1740_s12 = smov [#allocation8]   ;;  %s1595_s16 = scalar_lea.hbm %s1968_s5, 2048 }
  0x16   :  { %s64_s13 = sshll.u32 %s1740_s12, 4  ;;  %p1596_p8 = scmp.ne.s32.totalorder %s1968_s5, %s1595_s16  ;;  %s65_s13 = int_to_ptr.vmem [resolvable:$true] %s64_s13 }
  0x17   :  { %p1599_p9 = scmp.lt.u32.totalorder %s1595_s16, %s1968_s5 }
  0x19   :  { %p1601_p10 = pnand %p1599_p9, %p1596_p8 }
  0x1b   :  { %1604 = shalt.err (!%p1601_p10)
}
  0x1c   :  { %s1605_s22 = scalar_lea.vmem %s65_s13, 2048  ;;  %p1610_p12 = scmp.lt.s32.totalorder %s65_s13, %s65_s13 }
  0x1d   :  { %p1606_p11 = scmp.ne.s32.totalorder %s65_s13, %s1605_s22  ;;  %p1611_p13 = scmp.lt.s32.totalorder %s1605_s22, %s1605_s22 }
  0x1f   :  { %p1612_p0 = por %p1611_p13, %p1610_p12 }
  0x21   :  { %p1613_p1 = pnand %p1612_p0, %p1606_p11 }
  0x23   :  { %1616 = shalt.err (!%p1613_p1)
}
  0x24   :  { %s1741_s1 = smov 256   ;;  %s1742_s18 = smov 16  }
  0x25   :  { %70 = dma.hbm_to_vmem [thread:$0]  %s1968_s5, 2048, %s65_s13, [#allocation9], %s1741_s1, %s1741_s1, %s1742_s18  }
  0x26   :  { %s1743_s25 = smov [#allocation2]   ;;  %s1744_s29 = smov [#allocation7]  }
  0x27   :  { %s27_s26 = sshll.u32 %s1743_s25, 4  ;;  %s50_s30 = sshll.u32 %s1744_s29, 4  ;;  %s28_s26 = int_to_ptr.vmem [resolvable:$true] %s27_s26  ;;  %s1841_s30 = int_to_ptr.vmem [resolvable:$true] %s50_s30 }
  0x28   :  { %s1617_s15 = scalar_lea.hbm %s1963_s0, 128 }
  0x29   :  { %p1618_p2 = scmp.ne.s32.totalorder %s1963_s0, %s1617_s15  ;;  %p1621_p3 = scmp.lt.u32.totalorder %s1617_s15, %s1963_s0 }
  0x2b   :  { %p1623_p4 = pnand %p1621_p3, %p1618_p2 }
  0x2d   :  { %1626 = shalt.err (!%p1623_p4)
}
  0x2e   :  { %s1627_s5 = scalar_lea.vmem %s28_s26, 128  ;;  %p1632_p6 = scmp.lt.s32.totalorder %s28_s26, %s28_s26 }
  0x2f   :  { %p1628_p5 = scmp.ne.s32.totalorder %s28_s26, %s1627_s5  ;;  %p1633_p7 = scmp.lt.s32.totalorder %s1627_s5, %s1627_s5 }
  0x31   :  { %p1634_p8 = por %p1633_p7, %p1632_p6 }
  0x33   :  { %p1635_p9 = pnand %p1634_p8, %p1628_p5 }
  0x35   :  { %1638 = shalt.err (!%p1635_p9)
}
  0x36   :  { %30 = dma.hbm_to_vmem [thread:$0]  %s1963_s0, 128, %s28_s26, [#allocation3]  }
  0x37   :  { %s1639_s24 = scalar_lea.hbm %s1966_s3, 512 }
  0x38   :  { %p1640_p10 = scmp.ne.s32.totalorder %s1966_s3, %s1639_s24  ;;  %p1643_p11 = scmp.lt.u32.totalorder %s1639_s24, %s1966_s3 }
  0x3a   :  { %p1645_p12 = pnand %p1643_p11, %p1640_p10 }
  0x3c   :  { %1648 = shalt.err (!%p1645_p12)
}
  0x3d   :  { %s1649_s15 = scalar_lea.vmem %s1841_s30, 512  ;;  %p1654_p0 = scmp.lt.s32.totalorder %s1841_s30, %s1841_s30 }
  0x3e   :  { %p1650_p13 = scmp.ne.s32.totalorder %s1841_s30, %s1649_s15  ;;  %p1655_p1 = scmp.lt.s32.totalorder %s1649_s15, %s1649_s15 }
  0x40   :  { %p1656_p2 = por %p1655_p1, %p1654_p0 }
  0x42   :  { %p1657_p3 = pnand %p1656_p2, %p1650_p13 }
  0x44   :  { %1660 = shalt.err (!%p1657_p3)
}
  0x45   :  { %56 = dma.hbm_to_vmem [thread:$0]  %s1966_s3, 512, %s1841_s30, [#allocation6], %s1738_s27, %s1738_s27, %s1739_s28  }
  0x46   :  { %s1745_s16 = smov [#allocation10]   ;;  %s1746_s19 = smov [#allocation11]  }
  0x47   :  { %s78_s17 = sshll.u32 %s1745_s16, 4  ;;  %s92_s20 = sshll.u32 %s1746_s19, 4  ;;  %s79_s17 = int_to_ptr.vmem [resolvable:$true] %s78_s17  ;;  %s1875_s20 = int_to_ptr.vmem [resolvable:$true] %s92_s20 }
  0x48   :  { %s1661_s21 = scalar_lea.hbm %s1970_s7, 8192 }
  0x49   :  { %p1662_p4 = scmp.ne.s32.totalorder %s1970_s7, %s1661_s21  ;;  %p1665_p5 = scmp.lt.u32.totalorder %s1661_s21, %s1970_s7 }
  0x4b   :  { %p1667_p6 = pnand %p1665_p5, %p1662_p4 }
  0x4d   :  { %1670 = shalt.err (!%p1667_p6)
}
  0x4e   :  { %s1671_s3 = scalar_lea.vmem %s79_s17, 8192  ;;  %p1676_p8 = scmp.lt.s32.totalorder %s79_s17, %s79_s17 }
  0x4f   :  { %p1672_p7 = scmp.ne.s32.totalorder %s79_s17, %s1671_s3  ;;  %p1677_p9 = scmp.lt.s32.totalorder %s1671_s3, %s1671_s3 }
  0x51   :  { %p1678_p10 = por %p1677_p9, %p1676_p8 }
  0x53   :  { %p1679_p11 = pnand %p1678_p10, %p1672_p7 }
  0x55   :  { %1682 = shalt.err (!%p1679_p11)
}
  0x56   :  { %84 = dma.hbm_to_vmem [thread:$0]  %s1970_s7, 8192, %s79_s17, [#allocation9], %s1741_s1, %s1741_s1, %s1742_s18  }
  0x57   :  { %s1683_s15 = scalar_lea.hbm %s1972_s9, 2048 }
  0x58   :  { %p1684_p12 = scmp.ne.s32.totalorder %s1972_s9, %s1683_s15  ;;  %p1687_p13 = scmp.lt.u32.totalorder %s1683_s15, %s1972_s9 }
  0x5a   :  { %p1689_p0 = pnand %p1687_p13, %p1684_p12 }
  0x5c   :  { %1692 = shalt.err (!%p1689_p0)
}
  0x5d   :  { %s1693_s5 = scalar_lea.vmem %s1875_s20, 2048  ;;  %p1698_p2 = scmp.lt.s32.totalorder %s1875_s20, %s1875_s20 }
  0x5e   :  { %p1694_p1 = scmp.ne.s32.totalorder %s1875_s20, %s1693_s5  ;;  %p1699_p3 = scmp.lt.s32.totalorder %s1693_s5, %s1693_s5 }
  0x60   :  { %p1700_p4 = por %p1699_p3, %p1698_p2 }
  0x62   :  { %p1701_p5 = pnand %p1700_p4, %p1694_p1 }
  0x64   :  { %1704 = shalt.err (!%p1701_p5)
}
  0x65   :  { %98 = dma.hbm_to_vmem [thread:$0]  %s1972_s9, 2048, %s1875_s20, [#allocation12], %s1738_s27, %s1738_s27, %s1739_s28  }
  0x66   :  { %1727 = dma.done.wait [#allocation3], 128  }
  0x67   :  { %1728 = vsyncadd [#allocation3], 4294967168 }
  0x68   :  { %1729 = dma.done.wait [#allocation6], 1024  }
  0x69   :  { %1730 = vsyncadd [#allocation6], 4294966272 }
  0x6a   :  { %1731 = dma.done.wait [#allocation9], 10240  }
  0x6b   :  { %1732 = vsyncadd [#allocation9], 4294957056 }
  0x6c   :  { %1733 = dma.done.wait [#allocation12], 2048  }
  0x6d   :  { %1734 = vsyncadd [#allocation12], 4294965248  ;;  %v1747_v0 = vmov 0.0   ;;  %vm1748_vm0 = vmmov 0   ;;  %v1413_v1 = vld [vmem:[#allocation5] sm:$0xff]   ;;  %v1414_v2 = vld [vmem:[#allocation5 + $0x8] sm:$0xff]  }
  0x6e   :  { %1375 = vmatprep.subr.bf16.mxu1 %v1747_v0  ;;  %1383 = vmatprep.mubr.msk.bf16.mxu1 %vm1748_vm0, %v1747_v0  ;;  %v1415_v3 = vld [vmem:[#allocation5 + $0x10] sm:$0xff]   ;;  %v1416_v4 = vld [vmem:[#allocation5 + $0x18] sm:$0xff]   ;;  %v1417_v6 = vld [vmem:[#allocation7] sm:$0xff]   ;;  %vm161_vm1 = vcmask 523264   ;;  %v1749_v35 = vmov 0  }
  0x6f   :  { %1376 = vmatpush3.bf16.msra.mxu1 %v1413_v1  ;;  %v120_v5 = vld [vmem:[#allocation2] sm:$0xff]  ;;  %v1418_v8 = vld [vmem:[#allocation7 + $0x8] sm:$0xff]   ;;  %v1419_v9 = vld [vmem:[#allocation7 + $0x10] sm:$0xff]   ;;  %444 = vmatprep.mubr.bf16.mxu0 %v1749_v35 }
  0x70   :  { %1377 = vmatprep.subr.bf16.mxu1 %v1747_v0  ;;  %v121_v7 = vpack.c.bf16 %v120_v5, %v120_v5  ;;  %v1420_v10 = vld [vmem:[#allocation7 + $0x18] sm:$0xff]   ;;  %v1421_v11 = vld [vmem:[#allocation8 + $0x4] ss:$16 sps:$4 sm:$0xff]   ;;  %v1426_v13 = vld [vmem:[#allocation8] ss:$16 sps:$4 sm:$0xff]  }
  0x71   :  { %v1425_v12 = vld [vmem:[#allocation8 + $0xc] ss:$16 sps:$4 sm:$0xff]   ;;  %v1427_v14 = vld [vmem:[#allocation8 + $0x24] ss:$16 sps:$4 sm:$0xff]   ;;  %412 = vmatprep.subr.bf16.mxu0 %v1421_v11  ;;  %v1432_v15 = vld [vmem:[#allocation8 + $0x20] ss:$16 sps:$4 sm:$0xff]  }
  0x72   :  { %413 = vmatpush1.bf16.msra.mxu0 %v1426_v13  ;;  %v1433_v16 = vld [vmem:[#allocation8 + $0x44] ss:$16 sps:$4 sm:$0xff]   ;;  %v1232_v17 = vld [vmem:[%s1965_s2] ss:$0 sm:$0xff]  ;;  %v1431_v26 = vld [vmem:[#allocation8 + $0x2c] ss:$16 sps:$4 sm:$0xff]  }
  0x73   :  { %1378 = vmatpush3.bf16.msra.mxu1 %v1414_v2  ;;  %414 = vmatprep.subr.bf16.mxu0 %v1427_v14  ;;  %v1423_v24 = vld [vmem:[#allocation8 + $0x8] ss:$16 sps:$4 sm:$0xff]   ;;  %v1437_v28 = vld [vmem:[#allocation8 + $0x4c] ss:$16 sps:$4 sm:$0xff]   ;;  %v1438_v30 = vld [vmem:[#allocation8 + $0x40] ss:$16 sps:$4 sm:$0xff]  }
  0x74   :  { %1379 = vmatprep.subr.bf16.mxu1 %v1747_v0  ;;  %v1429_v27 = vld [vmem:[#allocation8 + $0x28] ss:$16 sps:$4 sm:$0xff]   ;;  %v1439_v31 = vld [vmem:[#allocation8 + $0x64] ss:$16 sps:$4 sm:$0xff]   ;;  %v1443_v32 = vld [vmem:[#allocation8 + $0x6c] ss:$16 sps:$4 sm:$0xff]  }
  0x75   :  { %v1435_v29 = vld [vmem:[#allocation8 + $0x48] ss:$16 sps:$4 sm:$0xff]   ;;  %v1444_v34 = vld [vmem:[#allocation8 + $0x60] ss:$16 sps:$4 sm:$0xff]   ;;  %v1447_v36 = vld [vmem:[#allocation10 + $0x4] ss:$16 sps:$4 sm:$0xff]  }
  0x76   :  { %415 = vmatpush1.bf16.msra.mxu0 %v1432_v15  ;;  %v1441_v33 = vld [vmem:[#allocation8 + $0x68] ss:$16 sps:$4 sm:$0xff]   ;;  %v1450_v37 = vld [vmem:[#allocation10 + $0xc] ss:$16 sps:$4 sm:$0xff]   ;;  %v1445_v45 = vld [vmem:[#allocation10] ss:$16 sps:$4 sm:$0xff]  }
  0x77   :  { %1380 = vmatpush3.bf16.msra.mxu1 %v1415_v3  ;;  %416 = vmatprep.subr.bf16.mxu0 %v1433_v16  ;;  %v1238_v38 = vld [vmem:[%s1967_s4] ss:$0 sm:$0xff]  ;;  %v1453_v48 = vld [vmem:[#allocation10 + $0x24] ss:$16 sps:$4 sm:$0xff]   ;;  %v1456_v49 = vld [vmem:[#allocation10 + $0x2c] ss:$16 sps:$4 sm:$0xff]  }
  0x78   :  { %1381 = vmatprep.subr.bf16.mxu1 %v1747_v0  ;;  %v1448_v46 = vld [vmem:[#allocation10 + $0x8] ss:$16 sps:$4 sm:$0xff]   ;;  %v1451_v50 = vld [vmem:[#allocation10 + $0x20] ss:$16 sps:$4 sm:$0xff]   ;;  %v1459_v52 = vld [vmem:[#allocation10 + $0x44] ss:$16 sps:$4 sm:$0xff]  }
  0x79   :  { %v1454_v51 = vld [vmem:[#allocation10 + $0x28] ss:$16 sps:$4 sm:$0xff]   ;;  %v1462_v53 = vld [vmem:[#allocation10 + $0x4c] ss:$16 sps:$4 sm:$0xff]   ;;  %v1457_v54 = vld [vmem:[#allocation10 + $0x40] ss:$16 sps:$4 sm:$0xff]  }
  0x7a   :  { %417 = vmatpush1.bf16.msra.mxu0 %v1438_v30  ;;  %v1460_v55 = vld [vmem:[#allocation10 + $0x48] ss:$16 sps:$4 sm:$0xff]   ;;  %v1465_v56 = vld [vmem:[#allocation10 + $0x64] ss:$16 sps:$4 sm:$0xff]   ;;  %v1468_v57 = vld [vmem:[#allocation10 + $0x6c] ss:$16 sps:$4 sm:$0xff]  }
  0x7b   :  { %1382 = vmatpush3.bf16.msra.mxu1 %v1416_v4  ;;  %418 = vmatprep.subr.bf16.mxu0 %v1439_v31  ;;  %v1463_v58 = vld [vmem:[#allocation10 + $0x60] ss:$16 sps:$4 sm:$0xff]   ;;  %v1466_v59 = vld [vmem:[#allocation10 + $0x68] ss:$16 sps:$4 sm:$0xff]   ;;  %v1471_v60 = vld [vmem:[#allocation10 + $0x84] ss:$16 sps:$4 sm:$0xff]  }
  0x7c   :  { %1387 = vmatprep.subr.bf16.mxu1 %v1747_v0  ;;  %v1474_v61 = vld [vmem:[#allocation10 + $0x8c] ss:$16 sps:$4 sm:$0xff]   ;;  %v1469_v62 = vld [vmem:[#allocation10 + $0x80] ss:$16 sps:$4 sm:$0xff]   ;;  %v1472_v63 = vld [vmem:[#allocation10 + $0x88] ss:$16 sps:$4 sm:$0xff]  }
  0x7d   :  { %v1480_v1 = vld [vmem:[#allocation10 + $0xac] ss:$16 sps:$4 sm:$0xff]   ;;  %v1475_v2 = vld [vmem:[#allocation10 + $0xa0] ss:$16 sps:$4 sm:$0xff]   ;;  %v1478_v3 = vld [vmem:[#allocation10 + $0xa8] ss:$16 sps:$4 sm:$0xff]  }
  0x7e   :  { %1384 = vmatmul.mubr.msk.bf16.vlgmr.msra.gmra.mrb[0].mxu1 %vm161_vm1, %v121_v7  ;;  %419 = vmatpush1.bf16.msra.mxu0 %v1444_v34  ;;  %v1483_v4 = vld [vmem:[#allocation10 + $0xc4] ss:$16 sps:$4 sm:$0xff]   ;;  %v1486_v5 = vld [vmem:[#allocation10 + $0xcc] ss:$16 sps:$4 sm:$0xff]   ;;  %v1484_v7 = vld [vmem:[#allocation10 + $0xc8] ss:$16 sps:$4 sm:$0xff]  }
  0x7f   :  { %1388 = vmatpush3.bf16.msra.mxu1 %v1417_v6  ;;  %1395 = vmatprep.mubr.msk.bf16.mxu1 %vm1748_vm0, %v1747_v0  ;;  %v1481_v6 = vld [vmem:[#allocation10 + $0xc0] ss:$16 sps:$4 sm:$0xff]   ;;  %v1490_v11 = vld [vmem:[#allocation10 + $0xe8] ss:$16 sps:$4 sm:$0xff]   ;;  %v1498_v13 = vld [vmem:[#allocation10 + $0x10c] ss:$16 sps:$4 sm:$0xff]  }
  0x80   :  { %1389 = vmatprep.subr.bf16.mxu1 %v1747_v0  ;;  %906 = vmatprep.subr.bf16.mxu0 %v1447_v36  ;;  %v1493_v14 = vld [vmem:[#allocation10 + $0x100] ss:$16 sps:$4 sm:$0xff]   ;;  %v1496_v15 = vld [vmem:[#allocation10 + $0x108] ss:$16 sps:$4 sm:$0xff]   ;;  %v1501_v16 = vld [vmem:[#allocation10 + $0x124] ss:$16 sps:$4 sm:$0xff]  }
  0x81   :  { %v1517_v30 = vld [vmem:[#allocation10 + $0x180] ss:$16 sps:$4 sm:$0xff]   ;;  %v1520_v31 = vld [vmem:[#allocation10 + $0x188] ss:$16 sps:$4 sm:$0xff]   ;;  %v1531_v36 = vld [vmem:[#allocation10 + $0x1c4] ss:$16 sps:$4 sm:$0xff]  }
  0x82   :  { %v1523_v34 = vld [vmem:[#allocation10 + $0x1a0] ss:$16 sps:$4 sm:$0xff]  }
  0x83   :  { %1390 = vmatpush3.bf16.msra.mxu1 %v1418_v8  ;;  %v1489_v8 = vld [vmem:[#allocation10 + $0xe4] ss:$16 sps:$4 sm:$0xff]  }
  0x84   :  { %1391 = vmatprep.subr.bf16.mxu1 %v1747_v0 }
  0x87   :  { %1392 = vmatpush3.bf16.msra.mxu1 %v1419_v9  ;;  %v1492_v9 = vld [vmem:[#allocation10 + $0xec] ss:$16 sps:$4 sm:$0xff]  }
  0x88   :  { %1393 = vmatprep.subr.bf16.mxu1 %v1747_v0  ;;  %v1477_v0 = vld [vmem:[#allocation10 + $0xa4] ss:$16 sps:$4 sm:$0xff]  }
  0x8b   :  { %1394 = vmatpush3.bf16.msra.mxu1 %v1420_v10  ;;  %v1487_v10 = vld [vmem:[#allocation10 + $0xe0] ss:$16 sps:$4 sm:$0xff]  }
  0x8c   :  { %453 = vmatprep.subr.bf16.mxu1 %v1425_v12  ;;  %v1495_v12 = vld [vmem:[#allocation10 + $0x104] ss:$16 sps:$4 sm:$0xff]  }
 0x151   :  { %v199_v18 = vpop.f32.mrb[0].mxu1 }
 0x152   :  { %v200_v19 = vadd.f32 %v1232_v17, %v199_v18  ;;  %v1385_v20 = vpop.f32.mrb[1].mxu1  ;;  %v1504_v17 = vld [vmem:[#allocation10 + $0x12c] ss:$16 sps:$4 sm:$0xff]   ;;  %v1499_v18 = vld [vmem:[#allocation10 + $0x120] ss:$16 sps:$4 sm:$0xff]  }
 0x153   :  { %v202_v21 = vpop.f32.mrb[2].mxu1  ;;  %v1507_v20 = vld [vmem:[#allocation10 + $0x144] ss:$16 sps:$4 sm:$0xff]  }
 0x154   :  { %v205_v22 = vmax.f32 %v200_v19, 0.0  ;;  %v1386_v23 = vpop.f32.mrb[3].mxu1  ;;  %v1502_v19 = vld [vmem:[#allocation10 + $0x128] ss:$16 sps:$4 sm:$0xff]   ;;  %v1510_v21 = vld [vmem:[#allocation10 + $0x14c] ss:$16 sps:$4 sm:$0xff]  }
 0x155   :  { %v1508_v23 = vld [vmem:[#allocation10 + $0x148] ss:$16 sps:$4 sm:$0xff]  }
 0x156   :  { %v206_v25 = vpack.c.bf16 %v205_v22, %v205_v22  ;;  %v1505_v22 = vld [vmem:[#allocation10 + $0x140] ss:$16 sps:$4 sm:$0xff]  }
 0x158   :  { %1396 = vmatmul.mubr.msk.bf16.vlgmr.msra.gmra.mrb[4].mxu1 %vm161_vm1, %v206_v25  ;;  %v1516_v25 = vld [vmem:[#allocation10 + $0x16c] ss:$16 sps:$4 sm:$0xff]  }
 0x159   :  { %454 = vmatpush1.bf16.msra.mxu1 %v1423_v24  ;;  %485 = vmatprep.mubr.bf16.mxu1 %v1749_v35  ;;  %v1513_v24 = vld [vmem:[#allocation10 + $0x164] ss:$16 sps:$4 sm:$0xff]   ;;  %v1526_v35 = vld [vmem:[#allocation10 + $0x1a8] ss:$16 sps:$4 sm:$0xff]  }
 0x15a   :  { %455 = vmatprep.subr.bf16.mxu1 %v1431_v26  ;;  %v1511_v26 = vld [vmem:[#allocation10 + $0x160] ss:$16 sps:$4 sm:$0xff]  }
 0x15d   :  { %456 = vmatpush1.bf16.msra.mxu1 %v1429_v27  ;;  %v1514_v27 = vld [vmem:[#allocation10 + $0x168] ss:$16 sps:$4 sm:$0xff]  }
 0x15e   :  { %457 = vmatprep.subr.bf16.mxu1 %v1437_v28  ;;  %v1519_v28 = vld [vmem:[#allocation10 + $0x184] ss:$16 sps:$4 sm:$0xff]  }
 0x161   :  { %458 = vmatpush1.bf16.msra.mxu1 %v1435_v29  ;;  %v1522_v29 = vld [vmem:[#allocation10 + $0x18c] ss:$16 sps:$4 sm:$0xff]  }
 0x162   :  { %459 = vmatprep.subr.bf16.mxu1 %v1443_v32  ;;  %v1525_v32 = vld [vmem:[#allocation10 + $0x1a4] ss:$16 sps:$4 sm:$0xff]  }
 0x165   :  { %460 = vmatpush1.bf16.msra.mxu1 %v1441_v33  ;;  %v1528_v33 = vld [vmem:[#allocation10 + $0x1ac] ss:$16 sps:$4 sm:$0xff]  }
 0x166   :  { %947 = vmatprep.subr.bf16.mxu1 %v1450_v37  ;;  %v1529_v37 = vld [vmem:[#allocation10 + $0x1c0] ss:$16 sps:$4 sm:$0xff]  }
 0x22b   :  { %v283_v39 = vpop.f32.mrb[4].mxu1 }
 0x22c   :  { %v284_v40 = vadd.f32 %v1238_v38, %v283_v39  ;;  %v1397_v41 = vpop.f32.mrb[5].mxu1  ;;  %v1534_v38 = vld [vmem:[#allocation10 + $0x1cc] ss:$16 sps:$4 sm:$0xff]   ;;  %v1532_v39 = vld [vmem:[#allocation10 + $0x1c8] ss:$16 sps:$4 sm:$0xff]  }
 0x22d   :  { %v286_v42 = vpop.f32.mrb[6].mxu1  ;;  %v1535_v41 = vld [vmem:[#allocation10 + $0x1e0] ss:$16 sps:$4 sm:$0xff]  }
 0x22e   :  { %v289_v43 = vmax.f32 %v284_v40, 0.0  ;;  %v1398_v44 = vpop.f32.mrb[7].mxu1  ;;  %v1537_v40 = vld [vmem:[#allocation10 + $0x1e4] ss:$16 sps:$4 sm:$0xff]   ;;  %v1540_v42 = vld [vmem:[#allocation10 + $0x1ec] ss:$16 sps:$4 sm:$0xff]  }
 0x22f   :  { %v1541_v44 = vld [vmem:[#allocation11 + $0x40] sm:$0xff]  }
 0x230   :  { %v290_v47 = vpack.c.bf16 %v289_v43, %v289_v43  ;;  %v1538_v43 = vld [vmem:[#allocation10 + $0x1e8] ss:$16 sps:$4 sm:$0xff]  }
 0x232   :  { %1260 = vmatmul.mubr.msk.bf16.vlgmr.msra.gmra.mrb[0].mxu0 %vm161_vm1, %v290_v47  ;;  %1261 = vmatmul.mubr.msk.bf16.vlgmr.msra.gmra.mrb[8].mxu1 %vm161_vm1, %v290_v47 }
 0x233   :  { %907 = vmatpush1.bf16.msra.mxu0 %v1445_v45  ;;  %948 = vmatpush1.bf16.msra.mxu1 %v1448_v46  ;;  %v309_v45 = vlaneseq }
 0x234   :  { %908 = vmatprep.subr.bf16.mxu0 %v1453_v48  ;;  %949 = vmatprep.subr.bf16.mxu1 %v1456_v49  ;;  %v307_v48 = vld [vmem:[%s1969_s6] sm:$0xf] }
 0x235   :  { %v1924_v46 = vshrl.u32 %v309_v45, 7 }
 0x237   :  { %909 = vmatpush1.bf16.msra.mxu0 %v1451_v50  ;;  %950 = vmatpush1.bf16.msra.mxu1 %v1454_v51  ;;  %v311_v47 = vsub.s32 0, %v1924_v46  ;;  %v315_v49 = vsub.s32 1, %v1924_v46  ;;  %v323_v50 = vsub.s32 3, %v1924_v46 }
 0x238   :  { %910 = vmatprep.subr.bf16.mxu0 %v1459_v52  ;;  %951 = vmatprep.subr.bf16.mxu1 %v1462_v53 }
 0x239   :  { %v312_v51 = vrot.slane %v307_v48, %v311_v47  ;;  %v316_v52 = vrot.slane %v307_v48, %v315_v49  ;;  %v324_v53 = vrot.slane %v307_v48, %v323_v50 }
 0x23b   :  { %911 = vmatpush1.bf16.msra.mxu0 %v1457_v54  ;;  %952 = vmatpush1.bf16.msra.mxu1 %v1460_v55 }
 0x23c   :  { %912 = vmatprep.subr.bf16.mxu0 %v1465_v56  ;;  %953 = vmatprep.subr.bf16.mxu1 %v1468_v57 }
 0x23f   :  { %913 = vmatpush1.bf16.msra.mxu0 %v1463_v58  ;;  %954 = vmatpush1.bf16.msra.mxu1 %v1466_v59 }
 0x240   :  { %914 = vmatprep.subr.bf16.mxu0 %v1471_v60  ;;  %955 = vmatprep.subr.bf16.mxu1 %v1474_v61 }
 0x243   :  { %915 = vmatpush1.bf16.msra.mxu0 %v1469_v62  ;;  %956 = vmatpush1.bf16.msra.mxu1 %v1472_v63 }
 0x244   :  { %916 = vmatprep.subr.bf16.mxu0 %v1477_v0  ;;  %957 = vmatprep.subr.bf16.mxu1 %v1480_v1 }
 0x247   :  { %917 = vmatpush1.bf16.msra.mxu0 %v1475_v2  ;;  %958 = vmatpush1.bf16.msra.mxu1 %v1478_v3 }
 0x248   :  { %918 = vmatprep.subr.bf16.mxu0 %v1483_v4  ;;  %959 = vmatprep.subr.bf16.mxu1 %v1486_v5  ;;  %v1542_v5 = vld [vmem:[#allocation11] sm:$0xff]  }
 0x24b   :  { %919 = vmatpush1.bf16.msra.mxu0 %v1481_v6  ;;  %960 = vmatpush1.bf16.msra.mxu1 %v1484_v7  ;;  %v1543_v7 = vld [vmem:[#allocation11 + $0x48] sm:$0xff]  }
 0x24c   :  { %920 = vmatprep.subr.bf16.mxu0 %v1489_v8  ;;  %961 = vmatprep.subr.bf16.mxu1 %v1492_v9  ;;  %v1544_v9 = vld [vmem:[#allocation11 + $0x8] sm:$0xff]  }
 0x24f   :  { %921 = vmatpush1.bf16.msra.mxu0 %v1487_v10  ;;  %962 = vmatpush1.bf16.msra.mxu1 %v1490_v11  ;;  %v1545_v10 = vld [vmem:[#allocation11 + $0x50] sm:$0xff]  }
 0x250   :  { %922 = vmatprep.subr.bf16.mxu0 %v1495_v12  ;;  %963 = vmatprep.subr.bf16.mxu1 %v1498_v13  ;;  %v1546_v11 = vld [vmem:[#allocation11 + $0x10] sm:$0xff]   ;;  %v1547_v12 = vld [vmem:[#allocation11 + $0x58] sm:$0xff]  }
 0x251   :  { %v1548_v13 = vld [vmem:[#allocation11 + $0x18] sm:$0xff]  }
 0x253   :  { %923 = vmatpush1.bf16.msra.mxu0 %v1493_v14  ;;  %964 = vmatpush1.bf16.msra.mxu1 %v1496_v15  ;;  %v1549_v14 = vld [vmem:[#allocation11 + $0x60] sm:$0xff]  }
 0x254   :  { %924 = vmatprep.subr.bf16.mxu0 %v1501_v16  ;;  %965 = vmatprep.subr.bf16.mxu1 %v1504_v17  ;;  %v1550_v15 = vld [vmem:[#allocation11 + $0x20] sm:$0xff]   ;;  %v319_v16 = vsub.s32 2, %v1924_v46  ;;  %v1551_v17 = vld [vmem:[#allocation11 + $0x68] sm:$0xff]  }
 0x257   :  { %925 = vmatpush1.bf16.msra.mxu0 %v1499_v18  ;;  %966 = vmatpush1.bf16.msra.mxu1 %v1502_v19  ;;  %v1552_v18 = vld [vmem:[#allocation11 + $0x28] sm:$0xff]   ;;  %v320_v19 = vrot.slane %v307_v48, %v319_v16 }
 0x258   :  { %926 = vmatprep.subr.bf16.mxu0 %v1507_v20  ;;  %967 = vmatprep.subr.bf16.mxu1 %v1510_v21  ;;  %v1553_v20 = vld [vmem:[#allocation11 + $0x70] sm:$0xff]  }
 0x259   :  { %v1554_v21 = vld [vmem:[#allocation11 + $0x30] sm:$0xff]  }
 0x25b   :  { %927 = vmatpush1.bf16.msra.mxu0 %v1505_v22  ;;  %968 = vmatpush1.bf16.msra.mxu1 %v1508_v23  ;;  %v1555_v23 = vld [vmem:[#allocation11 + $0x78] sm:$0xff]  }
 0x25c   :  { %928 = vmatprep.subr.bf16.mxu0 %v1513_v24  ;;  %969 = vmatprep.subr.bf16.mxu1 %v1516_v25  ;;  %v1556_v24 = vld [vmem:[#allocation11 + $0x38] sm:$0xff]  }
 0x25f   :  { %929 = vmatpush1.bf16.msra.mxu0 %v1511_v26  ;;  %970 = vmatpush1.bf16.msra.mxu1 %v1514_v27  ;;  %v564_v27 = vld [vmem:[%s1971_s8] sm:$0xf] }
 0x260   :  { %930 = vmatprep.subr.bf16.mxu0 %v1519_v28  ;;  %971 = vmatprep.subr.bf16.mxu1 %v1522_v29  ;;  %v569_v28 = vrot.slane %v564_v27, %v311_v47  ;;  %v573_v29 = vrot.slane %v564_v27, %v315_v49  ;;  %v1326_v49 = vld [vmem:[%s1973_s10] ss:$0 sm:$0xff]  ;;  %s1750_s10 = smov [#allocation13]  }
 0x261   :  { %s1220_s13 = sshll.u32 %s1750_s10, 4  ;;  %s1221_s13 = int_to_ptr.vmem [resolvable:$true] %s1220_s13 }
 0x262   :  { %s1705_s21 = scalar_lea.vmem %s1221_s13, 512  ;;  %p1710_p7 = scmp.lt.s32.totalorder %s1221_s13, %s1221_s13 }
 0x263   :  { %931 = vmatpush1.bf16.msra.mxu0 %v1517_v30  ;;  %972 = vmatpush1.bf16.msra.mxu1 %v1520_v31  ;;  %v577_v31 = vrot.slane %v564_v27, %v319_v16  ;;  %p1706_p6 = scmp.ne.s32.totalorder %s1221_s13, %s1705_s21  ;;  %p1711_p8 = scmp.lt.s32.totalorder %s1705_s21, %s1705_s21 }
 0x264   :  { %932 = vmatprep.subr.bf16.mxu0 %v1525_v32  ;;  %973 = vmatprep.subr.bf16.mxu1 %v1528_v33 }
 0x265   :  { %p1712_p9 = por %p1711_p8, %p1710_p7 }
 0x267   :  { %933 = vmatpush1.bf16.msra.mxu0 %v1523_v34  ;;  %974 = vmatpush1.bf16.msra.mxu1 %v1526_v35  ;;  %p1713_p10 = pnand %p1712_p9, %p1706_p6 }
 0x268   :  { %934 = vmatprep.subr.bf16.mxu0 %v1531_v36  ;;  %975 = vmatprep.subr.bf16.mxu1 %v1534_v38 }
 0x26b   :  { %935 = vmatpush1.bf16.msra.mxu0 %v1529_v37  ;;  %976 = vmatpush1.bf16.msra.mxu1 %v1532_v39  ;;  %v581_v37 = vrot.slane %v564_v27, %v323_v50 }
 0x26c   :  { %936 = vmatprep.subr.bf16.mxu0 %v1537_v40  ;;  %977 = vmatprep.subr.bf16.mxu1 %v1540_v42 }
 0x26f   :  { %937 = vmatpush1.bf16.msra.mxu0 %v1535_v41  ;;  %978 = vmatpush1.bf16.msra.mxu1 %v1538_v43 }
 0x270   :  { %1353 = vmatprep.subr.bf16.mxu0 %v1541_v44 }
 0x305   :  { %v446_v54 = vpop.f32.mrb[0].mxu0  ;;  %v487_v55 = vpop.f32.mrb[8].mxu1 }
 0x306   :  { %v447_v56 = vadd.f32 %v446_v54, %v312_v51  ;;  %v448_v57 = vpop.f32.mrb[1].mxu0  ;;  %v489_v58 = vpop.f32.mrb[9].mxu1  ;;  %v488_v22 = vadd.f32 %v487_v55, %v320_v19 }
 0x307   :  { %v449_v59 = vadd.f32 %v448_v57, %v316_v52  ;;  %v490_v60 = vadd.f32 %v489_v58, %v324_v53  ;;  %v450_v61 = vpop.f32.mrb[2].mxu0  ;;  %v491_v62 = vpop.f32.mrb[10].mxu1 }
 0x308   :  { %v494_v63 = vmax.f32 %v447_v56, 0.0  ;;  %v451_v0 = vpop.f32.mrb[3].mxu0  ;;  %v492_v1 = vpop.f32.mrb[11].mxu1  ;;  %v496_v25 = vmax.f32 %v488_v22, 0.0 }
 0x309   :  { %v495_v2 = vmax.f32 %v449_v59, 0.0  ;;  %v497_v3 = vmax.f32 %v490_v60, 0.0 }
 0x30a   :  { %v498_v6 = vpack.c.bf16 %v494_v63, %v494_v63  ;;  %v988_v26 = vpack.c.bf16 %v496_v25, %v496_v25 }
 0x30b   :  { %v499_v4 = vpack.c.bf16 %v495_v2, %v495_v2  ;;  %v989_v8 = vpack.c.bf16 %v497_v3, %v497_v3 }
 0x30d   :  { %938 = vmatprep.mubr.bf16.mxu0 %v499_v4  ;;  %979 = vmatprep.mubr.bf16.mxu1 %v499_v4 }
 0x30e   :  { %939 = vmatmul.mubr.bf16.vlgmr.msra.gmra.mrb[4].mxu0 %v498_v6  ;;  %980 = vmatmul.mubr.bf16.vlgmr.msra.gmra.mrb[12].mxu1 %v498_v6 }
 0x30f   :  { %1354 = vmatpush3.bf16.msra.mxu0 %v1542_v5  ;;  %1157 = vmatprep.mubr.bf16.mxu0 %v989_v8 }
 0x310   :  { %1355 = vmatprep.subr.bf16.mxu0 %v1543_v7 }
 0x313   :  { %1356 = vmatpush3.bf16.msra.mxu0 %v1544_v9 }
 0x314   :  { %1357 = vmatprep.subr.bf16.mxu0 %v1545_v10 }
 0x317   :  { %1358 = vmatpush3.bf16.msra.mxu0 %v1546_v11 }
 0x318   :  { %1359 = vmatprep.subr.bf16.mxu0 %v1547_v12 }
 0x31b   :  { %1360 = vmatpush3.bf16.msra.mxu0 %v1548_v13 }
 0x31c   :  { %1361 = vmatprep.subr.bf16.mxu0 %v1549_v14 }
 0x31f   :  { %1362 = vmatpush3.bf16.msra.mxu0 %v1550_v15 }
 0x320   :  { %1363 = vmatprep.subr.bf16.mxu0 %v1551_v17 }
 0x323   :  { %1364 = vmatpush3.bf16.msra.mxu0 %v1552_v18 }
 0x324   :  { %1365 = vmatprep.subr.bf16.mxu0 %v1553_v20 }
 0x327   :  { %1366 = vmatpush3.bf16.msra.mxu0 %v1554_v21 }
 0x328   :  { %1367 = vmatprep.subr.bf16.mxu0 %v1555_v23 }
 0x32b   :  { %1368 = vmatpush3.bf16.msra.mxu0 %v1556_v24 }
 0x32e   :  { %1158 = vmatmul.mubr.bf16.vlgmr.msra.gmra.mrb[8].mxu0 %v988_v26 }
 0x3e1   :  { %v940_v30 = vpop.f32.mrb[4].mxu0  ;;  %v981_v32 = vpop.f32.mrb[12].mxu1 }
 0x3e2   :  { %v941_v33 = vadd.f32 %v940_v30, %v569_v28  ;;  %v942_v34 = vpop.f32.mrb[5].mxu0  ;;  %v983_v35 = vpop.f32.mrb[13].mxu1  ;;  %v982_v42 = vadd.f32 %v981_v32, %v577_v31 }
 0x3e3   :  { %v943_v36 = vadd.f32 %v942_v34, %v573_v29  ;;  %v944_v38 = vpop.f32.mrb[6].mxu0  ;;  %v985_v39 = vpop.f32.mrb[14].mxu1  ;;  %v984_v44 = vadd.f32 %v983_v35, %v581_v37 }
 0x3e4   :  { %v945_v40 = vpop.f32.mrb[7].mxu0  ;;  %v986_v41 = vpop.f32.mrb[15].mxu1 }
 0x3e5   :  { %v1165_v43 = vadd.f32 %v943_v36, %v941_v33 }
 0x3e7   :  { %v1166_v45 = vadd.f32 %v1165_v43, %v982_v42 }
 0x3e9   :  { %v1167_v47 = vadd.f32 %v1166_v45, %v984_v44 }
 0x3eb   :  { %v1168_v46 = vmul.f32 0.25, %v1167_v47 }
 0x401   :  { %v1369_v48 = vpop.f32.mrb[8].mxu0 }
 0x402   :  { %v1370_v51 = vpop.f32.mrb[9].mxu0 }
 0x403   :  { %v1371_v52 = vadd.f32 %v1370_v51, %v1369_v48  ;;  %v1372_v53 = vpop.f32.mrb[10].mxu0 }
 0x404   :  { %v1373_v54 = vpop.f32.mrb[11].mxu0 }
 0x405   :  { %v1160_v50 = vadd.f32 %v1371_v52, %v1326_v49 }
 0x407   :  { %v1169_v55 = vsub.f32 %v1160_v50, %v1168_v46 }
 0x409   :  { %v1172_v56 = vadd.f32 %v1169_v55, %v982_v42  ;;  %v1170_v57 = vadd.f32 %v1169_v55, %v941_v33  ;;  %v1173_v58 = vadd.f32 %v1169_v55, %v984_v44  ;;  %v1171_v59 = vadd.f32 %v1169_v55, %v943_v36 }
 0x40b   :  { %1178 = vmax.xlane.f32.xlu1 %v1172_v56  ;;  %1174 = vmax.xlane.f32.xlu0 %v1170_v57 }
 0x40f   :  { %1180 = vmax.xlane.f32.xlu1 %v1173_v58  ;;  %1176 = vmax.xlane.f32.xlu0 %v1171_v59 }
 0x498   :  { %v1179_v60 = vpop.xlane.xlu1 %1178  ;;  %v1175_v61 = vpop.xlane.xlu0 %1174 }
 0x499   :  { %v1184_v62 = vsub.f32 %v1172_v56, %v1179_v60  ;;  %v1182_v63 = vsub.f32 %v1170_v57, %v1175_v61 }
 0x49b   :  { %v1186_v0 = vmul.f32 1.442695, %v1182_v63  ;;  %v1190_v3 = vmul.f32 1.442695, %v1184_v62 }
 0x49c   :  { %v1181_v1 = vpop.xlane.xlu1 %1180  ;;  %v1177_v2 = vpop.xlane.xlu0 %1176 }
 0x49d   :  { %v1183_v4 = vsub.f32 %v1171_v59, %v1177_v2  ;;  %1557 = vpow2.f32 %v1186_v0  ;;  %v1185_v5 = vsub.f32 %v1173_v58, %v1181_v1 }
 0x49e   :  { %1559 = vpow2.f32 %v1190_v3 }
 0x49f   :  { %v1188_v6 = vmul.f32 1.442695, %v1183_v4  ;;  %v1192_v7 = vmul.f32 1.442695, %v1185_v5 }
 0x4a1   :  { %1561 = vpow2.f32 %v1188_v6 }
 0x4a2   :  { %1563 = vpow2.f32 %v1192_v7 }
 0x4a7   :  { %v1558_v8 = vpop.eup %1557 }
 0x4a8   :  { %1194 = vadd.xlane.f32.xlu0 %v1558_v8  ;;  %v1560_v9 = vpop.eup %1559 }
 0x4ab   :  { %v1562_v10 = vpop.eup %1561 }
 0x4ac   :  { %1200 = vadd.xlane.f32.xlu0 %v1560_v9  ;;  %1197 = vadd.xlane.f32.xlu1 %v1562_v10  ;;  %v1564_v11 = vpop.eup %1563 }
 0x4b0   :  { %1203 = vadd.xlane.f32.xlu1 %v1564_v11 }
 0x535   :  { %v1195_v12 = vpop.xlane.xlu0 %1194 }
 0x536   :  { %1565 = vrcp.f32 %v1195_v12 }
 0x539   :  { %v1198_v13 = vpop.xlane.xlu1 %1197  ;;  %v1201_v14 = vpop.xlane.xlu0 %1200 }
 0x53a   :  { %1567 = vrcp.f32 %v1198_v13 }
 0x53b   :  { %1569 = vrcp.f32 %v1201_v14 }
 0x53d   :  { %v1204_v15 = vpop.xlane.xlu1 %1203 }
 0x53e   :  { %1571 = vrcp.f32 %v1204_v15 }
 0x540   :  { %v1566_v16 = vpop.eup %1565 }
 0x541   :  { %v1206_v17 = vmul.f32 %v1566_v16, %v1558_v8 }
 0x543   :  { %1210 = vst [vmem:[#allocation13] sm:$0xff] %v1206_v17 }
 0x544   :  { %v1568_v18 = vpop.eup %1567 }
 0x545   :  { %v1570_v19 = vpop.eup %1569  ;;  %v1207_v20 = vmul.f32 %v1568_v18, %v1562_v10 }
 0x546   :  { %v1208_v21 = vmul.f32 %v1570_v19, %v1560_v9 }
 0x547   :  { %1211 = vst [vmem:[#allocation13 + $0x8] sm:$0xff] %v1207_v20 }
 0x548   :  { %v1572_v22 = vpop.eup %1571  ;;  %1212 = vst [vmem:[#allocation13 + $0x10] sm:$0xff] %v1208_v21 }
 0x549   :  { %v1209_v23 = vmul.f32 %v1572_v22, %v1564_v11 }
 0x54b   :  { %1213 = vst [vmem:[#allocation13 + $0x18] sm:$0xff] %v1209_v23 }
 0x54c   :  { %1716 = shalt.err (!%p1713_p10)
}
 0x54d   :  { %s1717_s24 = scalar_lea.hbm %s1974_s11, 512 }
 0x54e   :  { %p1718_p11 = scmp.ne.s32.totalorder %s1974_s11, %s1717_s24  ;;  %p1721_p12 = scmp.lt.u32.totalorder %s1717_s24, %s1974_s11 }
 0x550   :  { %p1723_p13 = pnand %p1721_p12, %p1718_p11 }
 0x552   :  { %1726 = shalt.err (!%p1723_p13)
}
 0x553   :  { %1223 = dma.vmem_to_hbm [thread:$0]  %s1221_s13, 512, %s1974_s11, [#allocation4]  }
 0x554   :  { %1735 = dma.done.wait [#allocation4], 512  }
 0x555   :  { %1736 = vsyncadd [#allocation4], 4294966784 }
 0x556   :  { %1227 = vsyncpa [#allocation3], 1 }
 0x557   :  { %1228 = vsyncpa [#allocation6], 1 }
 0x558   :  { %1229 = vsyncpa [#allocation9], 1 }
 0x559   :  { %1230 = vsyncpa [#allocation12], 1 }
 0x55a   :  { %1231 = vsyncpa [#allocation4], 1 }

</bundles_post_ra>
